<compile_context>
chip_gen: v5e
topology: v5e:2x2
jax: 0.10.0
libtpu: 0.0.40
codegen_flags: <defaults>
</compile_context>

<pallas_src>
from typing import NamedTuple

import jax
import jax.numpy as jnp
from jax.experimental import pallas as pl
from jax.experimental.pallas import tpu as pltpu


def _round_up(x, m):
    return ((x + m - 1) // m) * m


def _device_vmem_bytes():
    """Physical VMEM of the attached TPU (conservative 64 MiB fallback)."""
    try:
        info = pltpu.get_tpu_info()
        cap = getattr(info, "vmem_capacity_bytes", None)
        if cap:
            return int(cap)
    except Exception:
        pass
    return 64 << 20  # v7x per-TensorCore VMEM; safe lower bound everywhere


def _working_set_bytes(tb, th, D, csz, osz, use_scratch):
    """Estimate of the pipelined VMEM working set for one grid step."""
    w = 2 * (tb * D * csz          # x tile (double-buffered by the pipeline)
             + D * th * csz        # W_enc tile
             + th * D * csz        # W_dec tile
             + th * 4 + D * 4      # f32 bias tiles
             + tb * D * osz)       # output tile
    if use_scratch:
        w += tb * D * 4            # resident f32 accumulator
    return w


def _choose_tiles(B, H_p, D, csz, osz, use_scratch, vmem_cap):
    """Pick (tb, n_batch_tiles, th) that fit the device's VMEM budget."""
    budget = max(vmem_cap - (8 << 20), 24 << 20)
    big_vmem = vmem_cap >= (96 << 20)        # v5e/v6e: 128 MiB; v7x: 64 MiB
    tb_pref = 512 if big_vmem else 256       # intensity ~ tb FLOPs / weight byte
    th_pref = 512 if big_vmem else 256

    B8 = _round_up(max(int(B), 1), 8)
    th_cands = [t for t in (512, 384, 256, 128)
                if t <= min(th_pref, H_p) and H_p % t == 0]
    if not th_cands:                          # defensive; H_p is a mult of 128
        th_cands = [min(H_p, 128)]

    def batch_tiling(max_tb):
        max_tb = max(8, _round_up(min(max_tb, B8), 8))
        n_bt = -(-B8 // max_tb)
        tb = _round_up(-(-B8 // n_bt), 8)     # near-equal tiles, minimal padding
        # v7x has 2 TensorCores: give the "parallel" batch axis >= 2 tiles when
        # there is enough work (harmless extra loop step on 1-TC chips).
        if n_bt == 1 and tb >= 256:
            n_bt = 2
            tb = _round_up(-(-B8 // 2), 8)
        return tb, n_bt

    tb, n_bt = batch_tiling(tb_pref)
    while True:
        for th in th_cands:                   # keep tb large, shrink th first
            if _working_set_bytes(tb, th, D, csz, osz, use_scratch) <= budget:
                return tb, n_bt, th
        if tb <= 8:
            return tb, n_bt, th_cands[-1]     # best effort for tiny VMEM
        tb, n_bt = batch_tiling(tb // 2)


# ---------------------------------------------------------------------------
# Kernels
# ---------------------------------------------------------------------------

def _crosscoder_kernel_scratch(x_ref, we_ref, be_ref, wd_ref, bd_ref,
                               out_ref, acc_ref):
    # x_ref : (tb, D) compute dtype     we_ref: (D, th)   be_ref: (1, th) f32
    # wd_ref: (th, D)                   bd_ref: (1, D) f32
    # out   : (tb, D) out dtype         acc   : (tb, D) f32, resident over h
    h = pl.program_id(1)

    @pl.when(h == 0)
    def _():
        acc_ref[...] = jnp.zeros_like(acc_ref)

    pre = jnp.dot(x_ref[...], we_ref[...], preferred_element_type=jnp.float32)
    acts = jnp.maximum(pre + be_ref[...], 0.0)
    acc_ref[...] += jnp.dot(acts.astype(wd_ref.dtype), wd_ref[...],
                            preferred_element_type=jnp.float32)

    @pl.when(h == pl.num_programs(1) - 1)
    def _():
        out_ref[...] = (acc_ref[...] + bd_ref[...]).astype(out_ref.dtype)


def _crosscoder_kernel_f32out(x_ref, we_ref, be_ref, wd_ref, bd_ref, out_ref):
    # f32 output: accumulate straight into out_ref (no extra VMEM scratch,
    # no final copy pass).  b_dec is folded in at the first hidden step.
    h = pl.program_id(1)
    pre = jnp.dot(x_ref[...], we_ref[...], preferred_element_type=jnp.float32)
    acts = jnp.maximum(pre + be_ref[...], 0.0)
    partial = jnp.dot(acts.astype(wd_ref.dtype), wd_ref[...],
                      preferred_element_type=jnp.float32)

    @pl.when(h == 0)
    def _():
        out_ref[...] = bd_ref[...] + partial

    @pl.when(h > 0)
    def _():
        out_ref[...] += partial


# ---------------------------------------------------------------------------
# Parameter preparation (hoisted out of the per-call path)
# ---------------------------------------------------------------------------

class CrossCoderParams(NamedTuple):
    we_flat: jax.Array        # (D, H_p)  compute dtype
    wd_flat: jax.Array        # (H_p, D)  compute dtype
    be2: jax.Array            # (1, H_p)  f32
    bd2: jax.Array            # (1, D)    f32
    n_models: int
    d_in: int
    d_in_p: int
    d_hidden: int
    H_p: int
    compute_dtype: jnp.dtype


def prepare_crosscoder_params(W_enc, W_dec, b_enc, b_dec, *,
                              compute_dtype=jnp.bfloat16):
    """Pad / flatten / cast the weights ONCE; reuse across forward calls."""
    n_models, d_in, H = W_enc.shape
    d_in_p = _round_up(d_in, max(128 // n_models, 8))
    D = n_models * d_in_p
    H_p = _round_up(H, 128)

    we = jnp.zeros((n_models, d_in_p, H_p), compute_dtype)
    we = we.at[:, :d_in, :H].set(W_enc.astype(compute_dtype))
    we_flat = we.reshape(D, H_p)

    wd = jnp.zeros((H_p, n_models, d_in_p), compute_dtype)
    wd = wd.at[:H, :, :d_in].set(W_dec.astype(compute_dtype))
    wd_flat = wd.reshape(H_p, D)

    be2 = jnp.zeros((1, H_p), jnp.float32).at[0, :H].set(
        b_enc.astype(jnp.float32))
    bd2 = (jnp.zeros((n_models, d_in_p), jnp.float32)
           .at[:, :d_in].set(b_dec.astype(jnp.float32))
           .reshape(1, D))

    return CrossCoderParams(we_flat, wd_flat, be2, bd2,
                            n_models, d_in, d_in_p, H, H_p,
                            jnp.dtype(compute_dtype))


# ---------------------------------------------------------------------------
# Forward
# ---------------------------------------------------------------------------

def crosscoder_forward(x, params: CrossCoderParams, *, out_dtype=None):
    """x: (B, n_models, d_in). Returns reconstruction (B, n_models, d_in)."""
    B, n_models, d_in = x.shape
    assert n_models == params.n_models and d_in == params.d_in
    out_dtype = jnp.dtype(x.dtype if out_dtype is None else out_dtype)

    compute_dtype = params.compute_dtype
    d_in_p, H_p = params.d_in_p, params.H_p
    D = n_models * d_in_p
    csz = jnp.dtype(compute_dtype).itemsize
    osz = out_dtype.itemsize

    # f32 outputs accumulate in-place in out_ref -> no f32 scratch needed.
    accumulate_in_out = out_dtype == jnp.dtype(jnp.float32)
    use_scratch = not accumulate_in_out

    vmem_cap = _device_vmem_bytes()
    tb, n_bt, th = _choose_tiles(B, H_p, D, csz, osz, use_scratch, vmem_cap)
    B_p = tb * n_bt

    # Per-call activation padding/flattening (weights are pre-padded).
    if B_p == B and d_in_p == d_in:
        x_flat = x.reshape(B, D).astype(compute_dtype)
    else:
        xp = jnp.zeros((B_p, n_models, d_in_p), compute_dtype)
        xp = xp.at[:B, :, :d_in].set(x.astype(compute_dtype))
        x_flat = xp.reshape(B_p, D)

    working = _working_set_bytes(tb, th, D, csz, osz, use_scratch)
    # Clamp to the device's physical VMEM (v7x: 64 MiB) with small headroom.
    vmem_limit = int(min(vmem_cap - (2 << 20),
                         max(working + (4 << 20), 32 << 20)))

    in_specs = [
        pl.BlockSpec((tb, D), lambda i, h: (i, 0)),   # x tile, resident over h
        pl.BlockSpec((D, th), lambda i, h: (0, h)),   # W_enc tile
        pl.BlockSpec((1, th), lambda i, h: (0, h)),   # b_enc tile
        pl.BlockSpec((th, D), lambda i, h: (h, 0)),   # W_dec tile
        pl.BlockSpec((1, D), lambda i, h: (0, 0)),    # b_dec
    ]
    out_spec = pl.BlockSpec((tb, D), lambda i, h: (i, 0))  # resident over h

    if accumulate_in_out:
        kernel = _crosscoder_kernel_f32out
        scratch = []
    else:
        kernel = _crosscoder_kernel_scratch
        scratch = [pltpu.VMEM((tb, D), jnp.float32)]

    out_flat = pl.pallas_call(
        kernel,
        out_shape=jax.ShapeDtypeStruct((B_p, D), out_dtype),
        grid_spec=pltpu.PrefetchScalarGridSpec(
            num_scalar_prefetch=0,
            grid=(n_bt, H_p // th),
            in_specs=in_specs,
            out_specs=out_spec,
            scratch_shapes=scratch,
        ),
        compiler_params=pltpu.CompilerParams(
            dimension_semantics=("parallel", "arbitrary"),
            vmem_limit_bytes=vmem_limit),
    )(x_flat, params.we_flat, params.be2, params.wd_flat, params.bd2)

    out = out_flat.reshape(B_p, n_models, d_in_p)
    if B_p != B or d_in_p != d_in:
        out = out[:B, :, :d_in]
    return out


# ---------------------------------------------------------------------------
# Init + pure-JAX reference (match the PyTorch module)
# ---------------------------------------------------------------------------

def init_crosscoder_params(key, d_in, d_hidden, dec_init_norm=0.08,
                           dtype=jnp.float32):
    """Deterministic re-implementation of CrossCoder.__init__ weight init."""
    W_dec = jax.random.normal(key, (d_hidden, 2, d_in), dtype=jnp.float32)
    norms = jnp.linalg.norm(W_dec, axis=-1, keepdims=True)
    W_dec = W_dec / norms * dec_init_norm
    W_enc = jnp.transpose(W_dec, (1, 2, 0))   # 'h m d -> m d h'
    b_enc = jnp.zeros((d_hidden,), dtype=jnp.float32)
    b_dec = jnp.zeros((2, d_in), dtype=jnp.float32)
    return (W_enc.astype(dtype), W_dec.astype(dtype),
            b_enc.astype(dtype), b_dec.astype(dtype))


def crosscoder_forward_ref(x, W_enc, W_dec, b_enc, b_dec):
    """Pure-JAX reference matching the PyTorch einsums."""
    x_enc = jnp.einsum('bmd,mdh->bh', x, W_enc)
    acts = jax.nn.relu(x_enc + b_enc)
    rec = jnp.einsum('bh,hmd->bmd', acts, W_dec)
    return rec + b_dec


if __name__ == "__main__":
    key = jax.random.PRNGKey(0)

    # Two small configs: one tile-aligned, one exercising every padding path.
    for (B, d_in, d_hidden) in [(16, 32, 64), (13, 40, 100)]:
        k_w, k_x = jax.random.split(jax.random.fold_in(key, B))
        W_enc, W_dec, b_enc, b_dec = init_crosscoder_params(
            k_w, d_in, d_hidden, dec_init_norm=0.08, dtype=jnp.float32)
        x = jax.random.normal(k_x, (B, 2, d_in), dtype=jnp.float32)

        ref = crosscoder_forward_ref(x, W_enc, W_dec, b_enc, b_dec)

        # f32 compute path (f32 output -> accumulate-in-out kernel): tight.
        params_f32 = prepare_crosscoder_params(
            W_enc, W_dec, b_enc, b_dec, compute_dtype=jnp.float32)
        out_f32 = jax.block_until_ready(crosscoder_forward(x, params_f32))
        assert out_f32.shape == (B, 2, d_in)
        assert jnp.allclose(out_f32, ref, atol=1e-4, rtol=1e-4), \
            "f32 mismatch vs reference"

        # Default bf16 matmul path (f32 accumulation, f32 output): loose.
        params_bf16 = prepare_crosscoder_params(W_enc, W_dec, b_enc, b_dec)
        out_bf = jax.block_until_ready(crosscoder_forward(x, params_bf16))
        assert out_bf.shape == (B, 2, d_in)
        assert jnp.allclose(out_bf, ref, atol=1e-2, rtol=5e-2), \
            "bf16-compute mismatch vs reference"

        # bf16 input / bf16 output -> exercises the scratch-accumulator kernel.
        x_bf = x.astype(jnp.bfloat16)
        ref_bf = crosscoder_forward_ref(
            x_bf.astype(jnp.float32), W_enc, W_dec, b_enc, b_dec)
        out_bfbf = jax.block_until_ready(crosscoder_forward(x_bf, params_bf16))
        assert out_bfbf.shape == (B, 2, d_in)
        assert out_bfbf.dtype == jnp.bfloat16
        assert jnp.allclose(out_bfbf.astype(jnp.float32), ref_bf,
                            atol=2e-2, rtol=5e-2), \
            "bf16-in/out mismatch vs reference"

    print("KERNEL_OK")
</pallas_src>

<mosaic_0001>
module attributes {stable_mosaic.version = 11 : i64} {
  func.func @_crosscoder_kernel_f32out(%arg0: i32, %arg1: i32, %arg2: memref<16x128xf32, #tpu.memory_space<vmem>>, %arg3: memref<128x128xf32, #tpu.memory_space<vmem>>, %arg4: memref<1x128xf32, #tpu.memory_space<vmem>>, %arg5: memref<128x128xf32, #tpu.memory_space<vmem>>, %arg6: memref<1x128xf32, #tpu.memory_space<vmem>>, %arg7: memref<16x128xf32, #tpu.memory_space<vmem>>) attributes {dimension_semantics = [#tpu.dimension_semantics<parallel>, #tpu.dimension_semantics<arbitrary>], iteration_bounds = array<i64: 1, 1>, scalar_prefetch = 0 : i64, scratch_operands = 0 : i64, tpu.core_type = #tpu.core_type<tc>, window_params = [{transform_indices = @transform_0, window_bounds = array<i64: 16, 128>}, {transform_indices = @transform_1, window_bounds = array<i64: 128, 128>}, {transform_indices = @transform_2, window_bounds = array<i64: 1, 128>}, {transform_indices = @transform_3, window_bounds = array<i64: 128, 128>}, {pipeline_mode = #tpu.pipeline_mode<synchronous>, transform_indices = @transform_4, window_bounds = array<i64: 1, 128>}, {transform_indices = @transform_5, window_bounds = array<i64: 16, 128>}]} {
    %c0 = arith.constant 0 : index
    %c0_0 = arith.constant 0 : index
    %0 = vector.load %arg2[%c0, %c0_0] : memref<16x128xf32, #tpu.memory_space<vmem>>, vector<16x128xf32>
    %c0_1 = arith.constant 0 : index
    %c0_2 = arith.constant 0 : index
    %1 = vector.load %arg3[%c0_1, %c0_2] : memref<128x128xf32, #tpu.memory_space<vmem>>, vector<128x128xf32>
    %cst = arith.constant dense<0.000000e+00> : vector<16x128xf32>
    %2 = tpu.matmul %0, %1, %cst {dimension_numbers = #tpu.dot_dimension_numbers<[1], [0], [0], [1], [0, 0, 1, 1], [], []>} : vector<16x128xf32>, vector<128x128xf32>, vector<16x128xf32> -> vector<16x128xf32>
    %c0_3 = arith.constant 0 : index
    %c0_4 = arith.constant 0 : index
    %3 = vector.load %arg4[%c0_3, %c0_4] : memref<1x128xf32, #tpu.memory_space<vmem>>, vector<1x128xf32>
    %4 = vector.broadcast %3 : vector<1x128xf32> to vector<16x128xf32>
    %5 = arith.addf %2, %4 : vector<16x128xf32>
    %cst_5 = arith.constant 0.000000e+00 : f32
    %6 = vector.broadcast %cst_5 : f32 to vector<16x128xf32>
    %7 = arith.maximumf %5, %6 : vector<16x128xf32>
    %c0_6 = arith.constant 0 : index
    %c0_7 = arith.constant 0 : index
    %8 = vector.load %arg5[%c0_6, %c0_7] : memref<128x128xf32, #tpu.memory_space<vmem>>, vector<128x128xf32>
    %cst_8 = arith.constant dense<0.000000e+00> : vector<16x128xf32>
    %9 = tpu.matmul %7, %8, %cst_8 {dimension_numbers = #tpu.dot_dimension_numbers<[1], [0], [0], [1], [0, 0, 1, 1], [], []>} : vector<16x128xf32>, vector<128x128xf32>, vector<16x128xf32> -> vector<16x128xf32>
    %c0_i32 = arith.constant 0 : i32
    %10 = arith.cmpi eq, %arg1, %c0_i32 : i32
    %11 = arith.extui %10 : i1 to i32
    %c0_i32_9 = arith.constant 0 : i32
    %12 = arith.cmpi ne, %11, %c0_i32_9 : i32
    scf.if %12 {
      %c0_12 = arith.constant 0 : index
      %c0_13 = arith.constant 0 : index
      %16 = vector.load %arg6[%c0_12, %c0_13] : memref<1x128xf32, #tpu.memory_space<vmem>>, vector<1x128xf32>
      %17 = vector.broadcast %16 : vector<1x128xf32> to vector<16x128xf32>
      %18 = arith.addf %17, %9 : vector<16x128xf32>
      %c0_14 = arith.constant 0 : index
      %c0_15 = arith.constant 0 : index
      %19 = vector.load %arg7[%c0_14, %c0_15] : memref<16x128xf32, #tpu.memory_space<vmem>>, vector<16x128xf32>
      tpu.vector_store %arg7[%c0_14, %c0_15], %18 {strides = array<i32>} : memref<16x128xf32, #tpu.memory_space<vmem>>, vector<16x128xf32>,
    } else {
    }
    %c0_i32_10 = arith.constant 0 : i32
    %13 = arith.cmpi sgt, %arg1, %c0_i32_10 : i32
    %14 = arith.extui %13 : i1 to i32
    %c0_i32_11 = arith.constant 0 : i32
    %15 = arith.cmpi ne, %14, %c0_i32_11 : i32
    scf.if %15 {
      %c0_12 = arith.constant 0 : index
      %c0_13 = arith.constant 0 : index
      %16 = vector.load %arg7[%c0_12, %c0_13] : memref<16x128xf32, #tpu.memory_space<vmem>>, vector<16x128xf32>
      %17 = arith.addf %16, %9 : vector<16x128xf32>
      %c0_14 = arith.constant 0 : index
      %c0_15 = arith.constant 0 : index
      %18 = vector.load %arg7[%c0_14, %c0_15] : memref<16x128xf32, #tpu.memory_space<vmem>>, vector<16x128xf32>
      tpu.vector_store %arg7[%c0_14, %c0_15], %17 {strides = array<i32>} : memref<16x128xf32, #tpu.memory_space<vmem>>, vector<16x128xf32>,
    } else {
    }
    return
  }
  func.func @transform_0(%arg0: i32, %arg1: i32) -> (i32, i32) {
    %c0_i32 = arith.constant 0 : i32
    %c0_i32_0 = arith.constant 0 : i32
    return %arg0, %c0_i32 : i32, i32
  }
  func.func @transform_1(%arg0: i32, %arg1: i32) -> (i32, i32) {
    %c0_i32 = arith.constant 0 : i32
    %c0_i32_0 = arith.constant 0 : i32
    return %c0_i32, %arg1 : i32, i32
  }
  func.func @transform_2(%arg0: i32, %arg1: i32) -> (i32, i32) {
    %c0_i32 = arith.constant 0 : i32
    %c0_i32_0 = arith.constant 0 : i32
    return %c0_i32, %arg1 : i32, i32
  }
  func.func @transform_3(%arg0: i32, %arg1: i32) -> (i32, i32) {
    %c0_i32 = arith.constant 0 : i32
    %c0_i32_0 = arith.constant 0 : i32
    return %arg1, %c0_i32 : i32, i32
  }
  func.func @transform_4(%arg0: i32, %arg1: i32) -> (i32, i32) {
    %c0_i32 = arith.constant 0 : i32
    %c0_i32_0 = arith.constant 0 : i32
    %c0_i32_1 = arith.constant 0 : i32
    return %c0_i32, %c0_i32_0 : i32, i32
  }
  func.func @transform_5(%arg0: i32, %arg1: i32) -> (i32, i32) {
    %c0_i32 = arith.constant 0 : i32
    %c0_i32_0 = arith.constant 0 : i32
    return %arg0, %c0_i32 : i32, i32
  }
}

</mosaic_0001>

<bundles_post_ra>
// kernel: tpu_custom_call.1
= control target key start
LH: loop header
LB: loop body
LE: loop exit
PB: predicated region body
PF: predicated region fallthrough
CT: control target
= control target key end

     0   :  { %10 = vsyncpa [#allocation3], 0  ;;  %s404_s0 = inlined_call_operand.hbm [shape: f32[16,128], index: 0, kind: input, shape index: {}]   ;;  %s405_s1 = inlined_call_operand.hbm [shape: f32[128,128], index: 1, kind: input, shape index: {}]   ;;  %s406_s2 = inlined_call_operand.vmem [shape: f32[1,128], index: 2, kind: input, shape index: {}]   ;;  %s407_s3 = inlined_call_operand.hbm [shape: f32[128,128], index: 3, kind: input, shape index: {}]   ;;  %s408_s4 = inlined_call_operand.vmem [shape: f32[1,128], index: 4, kind: input, shape index: {}]   ;;  %s409_s5 = inlined_call_operand.hbm [shape: f32[16,128], index: 5, kind: output, shape index: {}]  }
   0x1   :  { %11 = vsyncpa [#allocation6], 0 }
   0x2   :  { %12 = vsyncpa [#allocation4], 0  ;;  %s30_s20 = sshll.u32 %s405_s1, 4  ;;  %s338_s21 = smov [#allocation5]   ;;  %s31_s20 = int_to_ptr.hbm [resolvable:$true] %s30_s20 }
   0x3   :  { %s32_s22 = sshll.u32 %s338_s21, 4  ;;  %s17_s25 = sshll.u32 %s404_s0, 4  ;;  %s33_s22 = int_to_ptr.vmem [resolvable:$true] %s32_s22  ;;  %s18_s25 = int_to_ptr.hbm [resolvable:$true] %s17_s25 }
   0x4   :  { %s339_s26 = smov 128   ;;  %s340_s27 = smov 8  }
   0x5   :  { %38 = dma.hbm_to_vmem [thread:$0]  %s31_s20, 2048, %s33_s22, [#allocation6], %s339_s26, %s339_s26, %s340_s27  }
   0x6   :  { %s341_s28 = smov [#allocation2]   ;;  %s45_s1 = sshll.u32 %s407_s3, 4  ;;  %s46_s1 = int_to_ptr.hbm [resolvable:$true] %s45_s1 }
   0x7   :  { %s19_s29 = sshll.u32 %s341_s28, 4  ;;  %s342_s0 = smov [#allocation7]   ;;  %s20_s29 = int_to_ptr.vmem [resolvable:$true] %s19_s29 }
   0x8   :  { %25 = dma.hbm_to_vmem [thread:$0]  %s18_s25, 256, %s20_s29, [#allocation3], %s339_s26, %s339_s26, %s340_s27  }
   0x9   :  { %s47_s7 = sshll.u32 %s342_s0, 4  ;;  %s48_s7 = int_to_ptr.vmem [resolvable:$true] %s47_s7 }
   0xa   :  { %53 = dma.hbm_to_vmem [thread:$0]  %s46_s1, 2048, %s48_s7, [#allocation6], %s339_s26, %s339_s26, %s340_s27  }
   0xb   :  { %332 = dma.done.wait [#allocation3], 256  }
   0xc   :  { %333 = vsyncadd [#allocation3], 4294967040 }
   0xd   :  { %334 = dma.done.wait [#allocation6], 4096  }
   0xe   :  { %335 = vsyncadd [#allocation6], 4294963200  ;;  %v85_v0 = vld [vmem:[#allocation5 + $0x78] sm:$0xff]  ;;  %v84_v1 = vld [vmem:[#allocation5 + $0x70] sm:$0xff]  ;;  %s343_s11 = smov [#allocation8]  }
   0xf   :  { %196 = vmatpush.msra.mxu2 %v85_v0  ;;  %90 = vmatpush.msra.mxu0 %v85_v0  ;;  %v83_v2 = vld [vmem:[#allocation5 + $0x68] sm:$0xff]  ;;  %v82_v3 = vld [vmem:[#allocation5 + $0x60] sm:$0xff]  ;;  %v81_v4 = vld [vmem:[#allocation5 + $0x58] sm:$0xff]  ;;  %s180_s12 = sshll.u32 %s343_s11, 4  ;;  %s181_s12 = int_to_ptr.vmem [resolvable:$true] %s180_s12 }
  0x10   :  { %v130_v5 = vld [vmem:[#allocation7 + $0x78] sm:$0xff]  ;;  %v129_v6 = vld [vmem:[#allocation7 + $0x70] sm:$0xff]  ;;  %v128_v8 = vld [vmem:[#allocation7 + $0x68] sm:$0xff] }
  0x11   :  { %197 = vmatpush.msra.mxu2 %v84_v1  ;;  %91 = vmatpush.msra.mxu0 %v84_v1  ;;  %v80_v7 = vld [vmem:[#allocation5 + $0x50] sm:$0xff]  ;;  %v79_v9 = vld [vmem:[#allocation5 + $0x48] sm:$0xff]  ;;  %v127_v10 = vld [vmem:[#allocation7 + $0x60] sm:$0xff] }
  0x12   :  { %212 = vmatpush.msra.mxu3 %v130_v5  ;;  %131 = vmatpush.msra.mxu1 %v130_v5  ;;  %v78_v11 = vld [vmem:[#allocation5 + $0x40] sm:$0xff]  ;;  %v126_v12 = vld [vmem:[#allocation7 + $0x58] sm:$0xff]  ;;  %v125_v14 = vld [vmem:[#allocation7 + $0x50] sm:$0xff] }
  0x13   :  { %198 = vmatpush.msra.mxu2 %v83_v2  ;;  %92 = vmatpush.msra.mxu0 %v83_v2  ;;  %v77_v13 = vld [vmem:[#allocation5 + $0x38] sm:$0xff]  ;;  %v76_v15 = vld [vmem:[#allocation5 + $0x30] sm:$0xff]  ;;  %v124_v16 = vld [vmem:[#allocation7 + $0x48] sm:$0xff] }
  0x14   :  { %213 = vmatpush.msra.mxu3 %v129_v6  ;;  %132 = vmatpush.msra.mxu1 %v129_v6  ;;  %v75_v17 = vld [vmem:[#allocation5 + $0x28] sm:$0xff]  ;;  %v123_v18 = vld [vmem:[#allocation7 + $0x40] sm:$0xff]  ;;  %v122_v20 = vld [vmem:[#allocation7 + $0x38] sm:$0xff] }
  0x15   :  { %199 = vmatpush.msra.mxu2 %v82_v3  ;;  %93 = vmatpush.msra.mxu0 %v82_v3  ;;  %v74_v19 = vld [vmem:[#allocation5 + $0x20] sm:$0xff]  ;;  %v73_v21 = vld [vmem:[#allocation5 + $0x18] sm:$0xff]  ;;  %v121_v22 = vld [vmem:[#allocation7 + $0x30] sm:$0xff] }
  0x16   :  { %214 = vmatpush.msra.mxu3 %v128_v8  ;;  %133 = vmatpush.msra.mxu1 %v128_v8  ;;  %v72_v23 = vld [vmem:[#allocation5 + $0x10] sm:$0xff]  ;;  %v120_v24 = vld [vmem:[#allocation7 + $0x28] sm:$0xff]  ;;  %v119_v26 = vld [vmem:[#allocation7 + $0x20] sm:$0xff] }
  0x17   :  { %200 = vmatpush.msra.mxu2 %v81_v4  ;;  %94 = vmatpush.msra.mxu0 %v81_v4  ;;  %v71_v25 = vld [vmem:[#allocation5 + $0x8] sm:$0xff]  ;;  %v70_v27 = vld [vmem:[#allocation5] sm:$0xff]  ;;  %v69_v28 = vld [vmem:[#allocation2 + $0x8] sm:$0xff] }
  0x18   :  { %215 = vmatpush.msra.mxu3 %v127_v10  ;;  %134 = vmatpush.msra.mxu1 %v127_v10  ;;  %v68_v29 = vld [vmem:[#allocation2] sm:$0xff]  ;;  %v118_v30 = vld [vmem:[#allocation7 + $0x18] sm:$0xff]  ;;  %v116_v32 = vld [vmem:[#allocation7 + $0x8] sm:$0xff] }
  0x19   :  { %201 = vmatpush.msra.mxu2 %v80_v7  ;;  %95 = vmatpush.msra.mxu0 %v80_v7  ;;  %v117_v31 = vld [vmem:[#allocation7 + $0x10] sm:$0xff]  ;;  %v115_v33 = vld [vmem:[#allocation7] sm:$0xff] }
  0x1a   :  { %216 = vmatpush.msra.mxu3 %v126_v12  ;;  %135 = vmatpush.msra.mxu1 %v126_v12  ;;  %v234_v34 = vld [vmem:[%s406_s2] ss:$0 sm:$0xff]  ;;  %s182_s2 = sshll.u32 %s409_s5, 4  ;;  %s183_s2 = int_to_ptr.hbm [resolvable:$true] %s182_s2 }
  0x1b   :  { %202 = vmatpush.msra.mxu2 %v79_v9  ;;  %96 = vmatpush.msra.mxu0 %v79_v9  ;;  %v235_v41 = vld [vmem:[%s408_s4] ss:$0 sm:$0xff] }
  0x1c   :  { %217 = vmatpush.msra.mxu3 %v125_v14  ;;  %136 = vmatpush.msra.mxu1 %v125_v14 }
  0x1d   :  { %203 = vmatpush.msra.mxu2 %v78_v11  ;;  %97 = vmatpush.msra.mxu0 %v78_v11 }
  0x1e   :  { %218 = vmatpush.msra.mxu3 %v124_v16  ;;  %137 = vmatpush.msra.mxu1 %v124_v16 }
  0x1f   :  { %204 = vmatpush.msra.mxu2 %v77_v13  ;;  %98 = vmatpush.msra.mxu0 %v77_v13 }
  0x20   :  { %219 = vmatpush.msra.mxu3 %v123_v18  ;;  %138 = vmatpush.msra.mxu1 %v123_v18 }
  0x21   :  { %205 = vmatpush.msra.mxu2 %v76_v15  ;;  %99 = vmatpush.msra.mxu0 %v76_v15 }
  0x22   :  { %220 = vmatpush.msra.mxu3 %v122_v20  ;;  %139 = vmatpush.msra.mxu1 %v122_v20 }
  0x23   :  { %206 = vmatpush.msra.mxu2 %v75_v17  ;;  %100 = vmatpush.msra.mxu0 %v75_v17 }
  0x24   :  { %221 = vmatpush.msra.mxu3 %v121_v22  ;;  %140 = vmatpush.msra.mxu1 %v121_v22 }
  0x25   :  { %207 = vmatpush.msra.mxu2 %v74_v19  ;;  %101 = vmatpush.msra.mxu0 %v74_v19 }
  0x26   :  { %222 = vmatpush.msra.mxu3 %v120_v24  ;;  %141 = vmatpush.msra.mxu1 %v120_v24 }
  0x27   :  { %208 = vmatpush.msra.mxu2 %v73_v21  ;;  %102 = vmatpush.msra.mxu0 %v73_v21 }
  0x28   :  { %223 = vmatpush.msra.mxu3 %v119_v26  ;;  %142 = vmatpush.msra.mxu1 %v119_v26 }
  0x29   :  { %209 = vmatpush.msra.mxu2 %v72_v23  ;;  %103 = vmatpush.msra.mxu0 %v72_v23 }
  0x2a   :  { %224 = vmatpush.msra.mxu3 %v118_v30  ;;  %143 = vmatpush.msra.mxu1 %v118_v30 }
  0x2b   :  { %210 = vmatpush.msra.mxu2 %v71_v25  ;;  %104 = vmatpush.msra.mxu0 %v71_v25 }
  0x2c   :  { %225 = vmatpush.msra.mxu3 %v117_v31  ;;  %144 = vmatpush.msra.mxu1 %v117_v31 }
  0x2d   :  { %211 = vmatpush.msra.mxu2 %v70_v27  ;;  %105 = vmatpush.msra.mxu0 %v70_v27 }
  0x2e   :  { %109 = vmatmul.f32.vlgmr.msra.gmra.mxu2 %v69_v28  ;;  %106 = vmatmul.f32.vlgmr.msra.gmra.mxu0 %v68_v29 }
  0x2f   :  { %226 = vmatpush.msra.mxu3 %v116_v32  ;;  %145 = vmatpush.msra.mxu1 %v116_v32 }
  0x31   :  { %227 = vmatpush.msra.mxu3 %v115_v33  ;;  %146 = vmatpush.msra.mxu1 %v115_v33 }
  0xab   :  { %v107_v35 = vpop.f32.mrf.mxu0 }
  0xac   :  { %v108_v36 = vadd.f32 %v234_v34, %v107_v35 }
  0xae   :  { %v113_v37 = vmax.f32 %v108_v36, 0.0 }
  0xb0   :  { %147 = vmatmul.f32.vlgmr.msra.gmra.mxu1 %v113_v37 }
  0xb1   :  { %v110_v38 = vpop.f32.mrf.mxu2 }
  0xb2   :  { %v111_v39 = vadd.f32 %v234_v34, %v110_v38 }
  0xb4   :  { %v114_v40 = vmax.f32 %v111_v39, 0.0 }
  0xb6   :  { %150 = vmatmul.f32.vlgmr.msra.gmra.mxu3 %v114_v40 }
 0x12d   :  { %v148_v42 = vpop.f32.mrf.mxu1 }
 0x12e   :  { %v162_v43 = vadd.f32 %v235_v41, %v148_v42 }
 0x130   :  { %164 = vst [vmem:[#allocation8] sm:$0xff] %v162_v43 }
 0x139   :  { %v151_v44 = vpop.f32.mrf.mxu3 }
 0x13a   :  { %v163_v45 = vadd.f32 %v235_v41, %v151_v44 }
 0x13c   :  { %165 = vst [vmem:[#allocation8 + $0x8] sm:$0xff] %v163_v45 }
 0x13d   :  { %188 = dma.vmem_to_hbm [thread:$0]  %s181_s12, 256, %s183_s2, [#allocation4], %s339_s26, %s339_s26, %s340_s27  }
 0x13e   :  { %336 = dma.done.wait [#allocation4], 256  }
 0x13f   :  { %337 = vsyncadd [#allocation4], 4294967040 }
 0x140   :  { %193 = vsyncpa [#allocation3], 1 }
 0x141   :  { %194 = vsyncpa [#allocation6], 1 }
 0x142   :  { %195 = vsyncpa [#allocation4], 1 }

</bundles_post_ra>
